<compile_context>
chip_gen: v6e
topology: v6e:2x2x1
jax: 0.10.0
libtpu: 0.0.40
codegen_flags: <defaults>
</compile_context>

<pallas_src>
import functools
import math

import jax
import jax.numpy as jnp
from jax.experimental import pallas as pl
from jax.experimental.pallas import tpu as pltpu

_LANES = 128
_SUBLANES = 8


def _convex_comb_kernel(comb_ref, *refs, n):
    # comb_ref : SMEM (n,) float32 weights
    # refs[:n] : VMEM (tile_rows, 128) input tiles (original dtype)
    # refs[n]  : VMEM (tile_rows, 128) output tile (original dtype)
    o_ref = refs[n]
    acc = refs[0][...] * comb_ref[0]          # promotes to f32
    for i in range(1, n):                     # n is static & small -> unrolled
        acc = acc + refs[i][...] * comb_ref[i]
    o_ref[...] = acc.astype(o_ref.dtype)


def _round_up(x, m):
    return ((x + m - 1) // m) * m


def _pick_tile_rows(m_rows, n, itemsize):
    # Per-grid-step VMEM = (n inputs + 1 output) * double buffer * tile bytes.
    # ~12 MiB of pipelined buffers is comfortably under the scoped defaults on
    # v5e (16 MiB) and v6e/v7x (32 MiB).
    budget_bytes = 12 << 20
    bytes_per_row = (n + 1) * 2 * _LANES * itemsize
    cap_rows = max(_SUBLANES, (budget_bytes // bytes_per_row) // _SUBLANES * _SUBLANES)
    cap_rows = min(cap_rows, 8192)
    # Keep >= ~4 grid steps when the problem is big enough so "parallel" can
    # shard across TensorCores (v7x megacore); never below 8 rows.
    want_rows = _round_up(pl.cdiv(m_rows, 4), _SUBLANES)
    return max(_SUBLANES, min(cap_rows, want_rows))


def convex_combination(args, comb, *, tile_rows=None):
    """out = sum_i args[i] * comb[i]  (ConvexCombination.forward)."""
    n = len(args)
    assert comb.shape == (n,)
    orig_shape = args[0].shape
    orig_dtype = args[0].dtype
    total = math.prod(orig_shape) if orig_shape else 1
    comb_f32 = comb.astype(jnp.float32)

    align = _SUBLANES * _LANES                       # 1024-element aligned main body
    main_total = (total // align) * align
    tail_total = total - main_total

    if main_total == 0:
        # Degenerate tiny input: not worth a kernel launch.
        out = sum(args[i].astype(jnp.float32) * comb_f32[i] for i in range(n))
        return out.astype(orig_dtype).reshape(orig_shape)

    flats = [a.reshape(-1) for a in args]
    m_rows = main_total // _LANES
    mains = [f[:main_total].reshape(m_rows, _LANES) for f in flats]

    itemsize = jnp.dtype(orig_dtype).itemsize
    if tile_rows is None:
        tile_rows = _pick_tile_rows(m_rows, n, itemsize)
    grid = (pl.cdiv(m_rows, tile_rows),)

    per_step_bytes = (n + 1) * 2 * tile_rows * _LANES * itemsize
    vmem_limit = int(min(max(2 * per_step_bytes, 16 << 20), 40 << 20))

    in_specs = [pl.BlockSpec(memory_space=pltpu.MemorySpace.SMEM)]           # comb weights
    in_specs += [pl.BlockSpec((tile_rows, _LANES), lambda i: (i, 0))         # the n inputs
                 for _ in range(n)]

    out2d = pl.pallas_call(
        functools.partial(_convex_comb_kernel, n=n),
        out_shape=jax.ShapeDtypeStruct((m_rows, _LANES), orig_dtype),
        grid_spec=pltpu.PrefetchScalarGridSpec(
            num_scalar_prefetch=0,
            grid=grid,
            in_specs=in_specs,
            out_specs=pl.BlockSpec((tile_rows, _LANES), lambda i: (i, 0)),
        ),
        compiler_params=pltpu.CompilerParams(
            dimension_semantics=("parallel",),
            vmem_limit_bytes=vmem_limit,
        ),
    )(comb_f32, *mains)

    out_flat = out2d.reshape(-1)
    if tail_total:
        tail = sum(flats[i][main_total:].astype(jnp.float32) * comb_f32[i]
                   for i in range(n)).astype(orig_dtype)
        out_flat = jnp.concatenate([out_flat, tail])
    return out_flat.reshape(orig_shape)


if __name__ == "__main__":
    key = jax.random.PRNGKey(0)
    n = 3
    B, C, H, W = 2, 4, 16, 16  # NCHW, like the PyTorch callers

    keys = jax.random.split(key, n)
    xs = [jax.random.normal(k, (B, C, H, W), dtype=jnp.float32) for k in keys]

    # Deterministic parameter init: comb = ones(n) / n (matches nn.Parameter init).
    comb = jnp.ones((n,), dtype=jnp.float32) / n

    out = convex_combination(xs, comb)
    out = jax.block_until_ready(out)

    ref = sum(xs[i] * comb[i] for i in range(n))
    assert out.shape == (B, C, H, W)
    assert jnp.allclose(out, ref, atol=1e-6, rtol=1e-6)

    # Extra check: non-1024-aligned element count exercises the tail path.
    xs2 = [jax.random.normal(k, (1, 3, 11, 37), dtype=jnp.float32)
           for k in jax.random.split(jax.random.PRNGKey(1), n)]
    out2 = jax.block_until_ready(convex_combination(xs2, comb))
    ref2 = sum(xs2[i] * comb[i] for i in range(n))
    assert jnp.allclose(out2, ref2, atol=1e-6, rtol=1e-6)

    print("KERNEL_OK")
</pallas_src>

<mosaic_0001>
module attributes {stable_mosaic.version = 11 : i64} {
  func.func @_convex_comb_kernel(%arg0: i32, %arg1: memref<3xf32, #tpu.memory_space<smem>>, %arg2: memref<8x128xf32, #tpu.memory_space<vmem>>, %arg3: memref<8x128xf32, #tpu.memory_space<vmem>>, %arg4: memref<8x128xf32, #tpu.memory_space<vmem>>, %arg5: memref<8x128xf32, #tpu.memory_space<vmem>>) attributes {dimension_semantics = [#tpu.dimension_semantics<parallel>], iteration_bounds = array<i64: 2>, scalar_prefetch = 0 : i64, scratch_operands = 0 : i64, tpu.core_type = #tpu.core_type<tc>, window_params = [{transform_indices = @transform_0, window_bounds = array<i64: 3>}, {transform_indices = @transform_1, window_bounds = array<i64: 8, 128>}, {transform_indices = @transform_2, window_bounds = array<i64: 8, 128>}, {transform_indices = @transform_3, window_bounds = array<i64: 8, 128>}, {transform_indices = @transform_4, window_bounds = array<i64: 8, 128>}]} {
    %c0 = arith.constant 0 : index
    %c0_0 = arith.constant 0 : index
    %0 = vector.load %arg2[%c0, %c0_0] : memref<8x128xf32, #tpu.memory_space<vmem>>, vector<8x128xf32>
    %c0_1 = arith.constant 0 : index
    %1 = memref.load %arg1[%c0_1] : memref<3xf32, #tpu.memory_space<smem>>
    %2 = vector.broadcast %1 : f32 to vector<8x128xf32>
    %3 = arith.mulf %0, %2 : vector<8x128xf32>
    %c0_2 = arith.constant 0 : index
    %c0_3 = arith.constant 0 : index
    %4 = vector.load %arg3[%c0_2, %c0_3] : memref<8x128xf32, #tpu.memory_space<vmem>>, vector<8x128xf32>
    %c1 = arith.constant 1 : index
    %5 = memref.load %arg1[%c1] : memref<3xf32, #tpu.memory_space<smem>>
    %6 = vector.broadcast %5 : f32 to vector<8x128xf32>
    %7 = arith.mulf %4, %6 : vector<8x128xf32>
    %8 = arith.addf %3, %7 : vector<8x128xf32>
    %c0_4 = arith.constant 0 : index
    %c0_5 = arith.constant 0 : index
    %9 = vector.load %arg4[%c0_4, %c0_5] : memref<8x128xf32, #tpu.memory_space<vmem>>, vector<8x128xf32>
    %c2 = arith.constant 2 : index
    %10 = memref.load %arg1[%c2] : memref<3xf32, #tpu.memory_space<smem>>
    %11 = vector.broadcast %10 : f32 to vector<8x128xf32>
    %12 = arith.mulf %9, %11 : vector<8x128xf32>
    %13 = arith.addf %8, %12 : vector<8x128xf32>
    %c0_6 = arith.constant 0 : index
    %c0_7 = arith.constant 0 : index
    %14 = vector.load %arg5[%c0_6, %c0_7] : memref<8x128xf32, #tpu.memory_space<vmem>>, vector<8x128xf32>
    tpu.vector_store %arg5[%c0_6, %c0_7], %13 {strides = array<i32>} : memref<8x128xf32, #tpu.memory_space<vmem>>, vector<8x128xf32>,
    return
  }
  func.func @transform_0(%arg0: i32) -> i32 {
    %c0_i32 = arith.constant 0 : i32
    %c0_i32_0 = arith.constant 0 : i32
    return %c0_i32 : i32
  }
  func.func @transform_1(%arg0: i32) -> (i32, i32) {
    %c0_i32 = arith.constant 0 : i32
    %c0_i32_0 = arith.constant 0 : i32
    return %arg0, %c0_i32 : i32, i32
  }
  func.func @transform_2(%arg0: i32) -> (i32, i32) {
    %c0_i32 = arith.constant 0 : i32
    %c0_i32_0 = arith.constant 0 : i32
    return %arg0, %c0_i32 : i32, i32
  }
  func.func @transform_3(%arg0: i32) -> (i32, i32) {
    %c0_i32 = arith.constant 0 : i32
    %c0_i32_0 = arith.constant 0 : i32
    return %arg0, %c0_i32 : i32, i32
  }
  func.func @transform_4(%arg0: i32) -> (i32, i32) {
    %c0_i32 = arith.constant 0 : i32
    %c0_i32_0 = arith.constant 0 : i32
    return %arg0, %c0_i32 : i32, i32
  }
}

</mosaic_0001>

<bundles_post_ra>
// kernel: tpu_custom_call.1
= control target key start
LH: loop header
LB: loop body
LE: loop exit
PB: predicated region body
PF: predicated region fallthrough
CT: control target
= control target key end

     0   :  { %s977_s0 = inlined_call_operand.hbm [shape: f32[3], index: 0, kind: input, shape index: {}]   ;;  %s978_s1 = inlined_call_operand.hbm [shape: f32[16,128], index: 1, kind: input, shape index: {}]   ;;  %s979_s2 = inlined_call_operand.hbm [shape: f32[16,128], index: 2, kind: input, shape index: {}]   ;;  %s980_s3 = inlined_call_operand.hbm [shape: f32[16,128], index: 3, kind: input, shape index: {}]   ;;  %s981_s4 = inlined_call_operand.hbm [shape: f32[16,128], index: 4, kind: output, shape index: {}]  }
   0x1   :  { %989 = sst [smem:[#allocation17_spill]] %s979_s2 }
   0x2   :  { %9 = vsyncpa [#allocation5], 0 }
   0x3   :  { %10 = vsyncpa [#allocation3], 0 }
   0x4   :  { %12 = vsyncpa [#allocation3 + $0x1], 0 }
   0x5   :  { %13 = vsyncpa [#allocation8], 0 }
   0x6   :  { %15 = vsyncpa [#allocation8 + $0x1], 0 }
   0x7   :  { %16 = vsyncpa [#allocation4], 0 }
   0x8   :  { %18 = vsyncpa [#allocation4 + $0x1], 0  ;;  %s738_s15 = smov 0   ;;  %s740_s16 = smov 0  }
   0x9   :  { %s742_s17 = smov 0   ;;  %s744_s18 = smov 0  }
   0xa LB: > { %990 = sst [smem:[#allocation15_spill]] %s702_s17  ;;  %s759_s19 = sadd.s32 1, %s706_s18   ;;  %s706_s18 = sphi %s744_s18, %s1014_s18   ;;  %s702_s17 = sphi %s742_s17, %s1011_s17   ;;  %s698_s16 = sphi %s740_s16, %s1013_s16   ;;  %s694_s15 = sphi %s738_s15, %s1012_s15  }
   0xb   : > { %s52_s20 = sadd.s32 1, %s702_s17  ;;  %s49_s21 = ssub.s32 %s706_s18, %s759_s19 }
   0xc   : > { %p982_p0 = scmp.ne.s32.totalorder %s702_s17, %s698_s16  ;;  %p50_p1 = scmp.eq.s32.totalorder %s49_s21, 0 }
   0xd   : > { %p60_p2 = scmp.eq.s32.totalorder %s706_s18, 0  ;;  %p503_p4 = scmp.lt.s32.totalorder %s706_s18, 2 }
   0xe   : > { %s770_s22 = scalar_select %p50_p1, %s702_s17, %s52_s20  }
   0xf   : > { %p61_p5 = por %p60_p2, %p982_p0  ;;  %s176_s23 = sand.u32 1, %s702_s17  }
  0x10   : > { %991 = sst [smem:[#allocation16_spill]] %s770_s22  ;;  %s778_s24 = sshll.u32 %s176_s23, 3 }
  0x11   : > { %s781_s25 = sshll.u32 %s706_s18, 7  ;;  %p783_p6 = pnand %p503_p4, %p61_p5 }
  0x12   : > { %s194_s27 = sand.u32 1, %s706_s18   ;;  %s993_s2 = sld [smem:[#allocation17_spill]] }
  0x13   : > { %s198_s5 = scalar_lea.vmem [#allocation7], %s778_s24  ;;  %s795_s7 = scalar_lea.sflag [#allocation8], %s194_s27 }
  0x14   : > { %s205_s6 = sshll.u32 %s198_s5, 4  ;;  %p801_p8 = pneg %p783_p6  ;;  %s206_s6 = int_to_ptr.vmem [resolvable:$true] %s205_s6 }
  0x18   : > { %s792_s30 = scalar_lea.hbm %s993_s2, %s781_s25  ;;  %s544_s12 = scalar_lea.hbm %s993_s2, 256 }
  0x19   : > { %s539_s8 = scalar_lea.hbm %s792_s30, 128  ;;  %p545_p11 = scmp.lt.s32.totalorder %s792_s30, %s993_s2 }
  0x1a   : > { %p540_p7 = scmp.ne.s32.totalorder %s792_s30, %s539_s8  ;;  %p546_p12 = scmp.lt.s32.totalorder %s544_s12, %s539_s8 }
  0x1c   : > { %p542_p9 = pnand %p801_p8, %p540_p7  ;;  %p547_p13 = por %p546_p12, %p545_p11 }
  0x1e   : > { %p543_p10 = pneg %p542_p9 }
  0x20   : > { %p548_p1 = pnand %p547_p13, %p543_p10 }
  0x22   : > { %551 = shalt.err (!%p548_p1)
}
  0x23   : > { %s552_s20 = scalar_lea.vmem %s206_s6, 128  ;;  %s708_s21 = smov [#allocation7]  }
  0x24   : > { %p553_p2 = scmp.ne.s32.totalorder %s206_s6, %s552_s20  ;;  %s557_s27 = sshll.u32 %s708_s21, 4  ;;  %s558_s27 = int_to_ptr.vmem [resolvable:$false] %s557_s27 }
  0x25   : > { %s559_s28 = scalar_lea.vmem %s558_s27, 256  ;;  %p560_p7 = scmp.lt.s32.totalorder %s206_s6, %s558_s27 }
  0x26   : > { %p555_p4 = pnand %p553_p2, %p801_p8  ;;  %p561_p9 = scmp.lt.s32.totalorder %s559_s28, %s552_s20 }
  0x28   : > { %p556_p5 = pneg %p555_p4  ;;  %p562_p3 = por %p561_p9, %p560_p7 }
  0x2a   : > { %p563_p0 = pnand %p562_p3, %p556_p5 }
  0x2c   : > { %566 = shalt.err (!%p563_p0)
}
  0x2d   : > { %494 = dma.hbm_to_vmem [thread:$0]  (!%p783_p6), %s792_s30, 128, %s206_s6, %s795_s7  }
  0x2e   : > { %s821_s29 = sadd.s32 4294967295, %s706_s18   ;;  %s450_s5 = sadd.s32 4294967294, %s706_s18  }
  0x2f   : > { %p65_p0 = scmp.ne.s32.totalorder %s698_s16, %s694_s15  ;;  %p983_p3 = scmp.eq.s32.totalorder %s821_s29, 0 }
  0x30   : > { %p141_p10 = scmp.eq.s32.totalorder %s821_s29, 1  ;;  %p147_p11 = scmp.eq.s32.totalorder %s450_s5, 1 }
  0x31   : > { %p830_p12 = por %p983_p3, %p65_p0  ;;  %p451_p13 = scmp.ge.s32.totalorder %s706_s18, 1 }
  0x32   : > { %p996_p1 = scmp.ne.s32.totalorder %s702_s17, %s698_s16  ;;  %p842_p4 = por %p147_p11, %p65_p0 }
  0x33   : > { %s995_s8 = scalar_select %p830_p12, 1, 0 }
  0x34   : > { %p838_p2 = por %p141_p10, %p996_p1  ;;  %p154_p5 = scmp.lt.s32.totalorder %s706_s18, 3 }
  0x35   : > { %s998_s6 = scalar_select %p842_p4, 1, 0 }
  0x36   : > { %s997_s30 = scalar_select %p838_p2, 1, 0 }
  0x37   : > { %p847_p7 = pnand %p451_p13, %p154_p5  ;;  %s855_s13 = scalar_lea.hbm %s978_s1, %s781_s25 }
  0x38   : > { %s180_s14 = scalar_lea.vmem [#allocation6], %s778_s24  ;;  %s177_s21 = scalar_lea.sflag [#allocation3], %s176_s23 }
  0x39   : > { %s999_s10 = scalar_select %p847_p7, 1, 0 }
  0x3a   : > { %s187_s20 = sshll.u32 %s180_s14, 4  ;;  %s567_s27 = scalar_lea.hbm %s855_s13, 128  ;;  %s188_s20 = int_to_ptr.vmem [resolvable:$true] %s187_s20 }
  0x3b   : > { %p568_p0 = scmp.ne.s32.totalorder %s855_s13, %s567_s27  ;;  %s572_s11 = scalar_lea.hbm %s978_s1, 256 }
  0x3c   : > { %p573_p13 = scmp.lt.s32.totalorder %s855_s13, %s978_s1  ;;  %p574_p1 = scmp.lt.s32.totalorder %s572_s11, %s567_s27 }
  0x3d   : > { %p570_p10 = pnand %p568_p0, %p801_p8 }
  0x3e   : > { %p575_p5 = por %p574_p1, %p573_p13 }
  0x3f   : > { %p571_p11 = pneg %p570_p10 }
  0x41   : > { %p576_p3 = pnand %p575_p5, %p571_p11 }
  0x43   : > { %579 = shalt.err (!%p576_p3)
}
  0x44   : > { %s580_s14 = scalar_lea.vmem %s188_s20, 128  ;;  %s709_s23 = smov [#allocation6]  }
  0x45   : > { %p581_p9 = scmp.ne.s32.totalorder %s188_s20, %s580_s14  ;;  %s585_s22 = sshll.u32 %s709_s23, 4  ;;  %s586_s22 = int_to_ptr.vmem [resolvable:$false] %s585_s22 }
  0x46   : > { %s587_s17 = scalar_lea.vmem %s586_s22, 256  ;;  %p588_p0 = scmp.lt.s32.totalorder %s188_s20, %s586_s22 }
  0x47   : > { %p583_p4 = pnand %p581_p9, %p801_p8  ;;  %p589_p10 = scmp.lt.s32.totalorder %s587_s17, %s580_s14 }
  0x49   : > { %p584_p2 = pneg %p583_p4  ;;  %p590_p12 = por %p589_p10, %p588_p0 }
  0x4b   : > { %p591_p7 = pnand %p590_p12, %p584_p2 }
  0x4d   : > { %594 = shalt.err (!%p591_p7)
}
  0x4e   : > { %491 = dma.hbm_to_vmem [thread:$0]  (!%p783_p6), %s855_s13, 128, %s188_s20, %s177_s21  }
  0x4f   : > { %p1000_p3 = scmp.eq.s32.totalorder %s821_s29, 0  ;;  %p1001_p4 = scmp.ne.s32.totalorder %s999_s10, 0 }
  0x50   : > { %s887_s17 = scalar_lea.hbm %s980_s3, %s781_s25  ;;  %s216_s22 = scalar_lea.vmem [#allocation9], %s778_s24 }
  0x51   : > { %p1002_p9 = pneg %p1001_p4  ;;  %s223_s28 = sshll.u32 %s216_s22, 4  ;;  %s224_s28 = int_to_ptr.vmem [resolvable:$true] %s223_s28 }
  0x52   : > { %s710_s5 = smov [#allocation2]   ;;  %s606_s13 = scalar_lea.hbm %s887_s17, 128 }
  0x53   : > { %p485_p11 = pnand %p1002_p9, %p1000_p3  ;;  %p607_p12 = scmp.ne.s32.totalorder %s887_s17, %s606_s13 }
  0x54   : > { %s611_s25 = scalar_lea.hbm %s980_s3, 256  ;;  %p612_p13 = scmp.lt.s32.totalorder %s887_s17, %s980_s3 }
  0x55   : > { %487 = dma.hbm_to_smem (!%p485_p11), %s977_s0, 16, %s710_s5, [#allocation5]  }
  0x56   : > { %p609_p2 = pnand %p607_p12, %p801_p8  ;;  %p613_p1 = scmp.lt.s32.totalorder %s611_s25, %s606_s13 }
  0x58   : > { %p610_p7 = pneg %p609_p2  ;;  %p614_p5 = por %p613_p1, %p612_p13 }
  0x5a   : > { %p615_p0 = pnand %p614_p5, %p610_p7 }
  0x5c   : > { %618 = shalt.err (!%p615_p0)
}
  0x5d   : > { %s619_s24 = scalar_lea.vmem %s224_s28, 128  ;;  %s711_s2 = smov [#allocation9]  }
  0x5e   : > { %p620_p10 = scmp.ne.s32.totalorder %s224_s28, %s619_s24  ;;  %s624_s27 = sshll.u32 %s711_s2, 4  ;;  %s625_s27 = int_to_ptr.vmem [resolvable:$false] %s624_s27 }
  0x5f   : > { %s626_s22 = scalar_lea.vmem %s625_s27, 256  ;;  %p627_p11 = scmp.lt.s32.totalorder %s224_s28, %s625_s27 }
  0x60   : > { %p622_p3 = pnand %p620_p10, %p801_p8  ;;  %p628_p12 = scmp.lt.s32.totalorder %s626_s22, %s619_s24 }
  0x62   : > { %p623_p9 = pneg %p622_p3  ;;  %p629_p2 = por %p628_p12, %p627_p11 }
  0x64   : > { %p630_p4 = pnand %p629_p2, %p623_p9 }
  0x66   : > { %633 = shalt.err (!%p630_p4)
}
  0x67   : > { %497 = dma.hbm_to_vmem [thread:$0]  (!%p783_p6), %s887_s17, 128, %s224_s28, %s795_s7  }
  0x68   : > { %p1003_p7 = scmp.ne.s32.totalorder %s999_s10, 0 }
  0x69   : > { %p1004_p8 = scmp.eq.s32.totalorder (!%p1003_p7), %s821_s29, 0 }
  0x6a   : > { %232 = sbr.rel (%p1003_p7) target bundleno = 148 (0x94), region = 36 }
  0x6f   : > { %677 = dma.done.wait (%p1004_p8), [#allocation5], 16   ;;  %p1005_p13 = pmov %p1004_p8 }
  0x70   : > { %s917_s9 = sand.u32 1, %s698_s16   ;;  %p1006_p6 = scmp.ne.s32.totalorder %s995_s8, 0 }
  0x71   : > { %679 = vsyncadd (%p1005_p13), [#allocation5], 4294967280  ;;  %s920_s5 = sshll.u32 %s917_s9, 3  ;;  %s239_s26 = scalar_lea.sflag [#allocation3], %s917_s9 }
  0x72   : > { %s242_s7 = scalar_lea.vmem [#allocation6], %s920_s5 }
  0x73   : > { %681 = dma.done.wait (%p1006_p6), %s239_s26, 128  }
  0x74   : > { %683 = vsyncadd (%p1006_p6), %s239_s26, 4294967168  ;;  %s247_s10 = sand.u32 1, %s821_s29   ;;  %s251_s28 = scalar_lea.vmem [#allocation7], %s920_s5 }
  0x75   : > { %s248_s17 = scalar_lea.sflag [#allocation8], %s247_s10 }
  0x76   : > { %685 = dma.done.wait (%p1006_p6), %s248_s17, 256  }
  0x77   : > { %687 = vsyncadd (%p1006_p6), %s248_s17, 4294967040  ;;  %s260_s11 = scalar_lea.vmem [#allocation9], %s920_s5 }
  0x78   : > { %265 = sfence }
  0x79   : > { %s297_s12 = sld [smem:[#allocation2]]  ;;  %v296_v0 = vld [vmem:[%s242_s7] sm:$0xff]  ;;  %v300_v1 = vld [vmem:[%s251_s28] sm:$0xff]  ;;  %s295_s8 = scalar_lea.vmem [#allocation10], %s920_s5 }
  0x7a   : > { %s466_s13 = sld [smem:[#allocation2 + $0x1]]  ;;  %v305_v3 = vld [vmem:[%s260_s11] sm:$0xff]  ;;  %s325_s21 = sshll.u32 %s295_s8, 4  ;;  %s937_s21 = int_to_ptr.vmem [resolvable:$true] %s325_s21 }
  0x7b   : > { %s467_s20 = sld [smem:[#allocation2 + $0x2]]  ;;  %s469_s25 = sshll.u32 %s821_s29, 7 }
  0x7c   : > { %s323_s24 = scalar_lea.hbm %s981_s4, %s469_s25  ;;  %s312_s2 = scalar_lea.sflag [#allocation4], %s917_s9 }
  0x7d   : > { %s634_s27 = scalar_lea.vmem %s937_s21, 128  ;;  %p1007_p1 = scmp.ne.s32.totalorder %s997_s30, 0 }
  0x7e   : > { %p635_p4 = scmp.ne.s32.totalorder %s937_s21, %s634_s27  ;;  %s712_s22 = smov [#allocation10]  }
  0x7f   : > { %v298_v2 = vstv %s297_s12  ;;  %s638_s29 = sshll.u32 %s712_s22, 4  ;;  %s639_s29 = int_to_ptr.vmem [resolvable:$false] %s638_s29 }
  0x80   : > { %v299_v4 = vmul.f32 %v298_v2, %v296_v0  ;;  %v302_v5 = vstv %s466_s13  ;;  %p636_p5 = pnand %p635_p4, %p1007_p1  ;;  %s640_s5 = scalar_lea.vmem %s639_s29, 256 }
  0x81   : > { %v303_v6 = vmul.f32 %v302_v5, %v300_v1  ;;  %v307_v7 = vstv %s467_s20  ;;  %p641_p10 = scmp.lt.s32.totalorder %s937_s21, %s639_s29  ;;  %p642_p3 = scmp.lt.s32.totalorder %s640_s5, %s634_s27 }
  0x82   : > { %v308_v8 = vmul.f32 %v307_v7, %v305_v3  ;;  %p637_p0 = pneg %p636_p5 }
  0x83   : > { %v304_v9 = vadd.f32 %v303_v6, %v299_v4  ;;  %p643_p9 = por %p642_p3, %p641_p10 }
  0x85   : > { %v309_v10 = vadd.f32 %v308_v8, %v304_v9  ;;  %p644_p11 = pnand %p643_p9, %p637_p0 }
  0x87   : > { %310 = vst [vmem:[%s295_s8] sm:$0xff] %v309_v10 }
  0x88   : > { %647 = shalt.err (!%p644_p11)
}
  0x89   : > { %s648_s26 = scalar_lea.hbm %s323_s24, 128  ;;  %s652_s10 = scalar_lea.hbm %s981_s4, 256 }
  0x8a   : > { %p649_p12 = scmp.ne.s32.totalorder %s323_s24, %s648_s26  ;;  %p653_p8 = scmp.lt.s32.totalorder %s323_s24, %s981_s4 }
  0x8b   : > { %p654_p13 = scmp.lt.s32.totalorder %s652_s10, %s648_s26 }
  0x8c   : > { %p650_p2 = pnand %p649_p12, %p1007_p1 }
  0x8d   : > { %p655_p6 = por %p654_p13, %p653_p8 }
  0x8e   : > { %p651_p7 = pneg %p650_p2 }
  0x90   : > { %p656_p4 = pnand %p655_p6, %p651_p7 }
  0x92   : > { %659 = shalt.err (!%p656_p4)
}
  0x93   : > { %482 = dma.vmem_to_hbm [thread:$0]  (%p1007_p1), %s937_s21, 128, %s323_s24, %s312_s2  }
  0x94 PF: > { %s337_s11 = sand.u32 1, %s694_s15   ;;  %p1008_p5 = scmp.ne.s32.totalorder %s998_s6, 0 }
  0x95   : > { %p1009_p0 = scmp.ge.s32.totalorder %s706_s18, 2  ;;  %s338_s12 = scalar_lea.sflag [#allocation4], %s337_s11 }
  0x97   : > { %p499_p10 = pnand %p1009_p0, %p1008_p5 }
  0x99   : > { %p500_p3 = pneg %p499_p10 }
  0x9b   : > { %689 = dma.done.wait (%p500_p3), %s338_s12, 128  }
  0x9c   : > { %691 = vsyncadd (%p500_p3), %s338_s12, 4294967168  ;;  %s1010_s13 = sld [smem:[#allocation15_spill]]  ;;  %p21_p9 = scmp.ge.s32.totalorder %s759_s19, 4  }
  0x9d   : > { %s1011_s17 = sld [smem:[#allocation16_spill]]  ;;  %s1012_s15 = smov %s698_s16 }
  0x9e   : > { %s1014_s18 = smov %s759_s19  ;;  %23 = sbr.rel (!%p21_p9) target bundleno = 10 (0xa), region = 110 }
  0xa2   : > { %s1013_s16 = smov %s1010_s13 }
  0xa3   :  { %343 = vsyncpa [#allocation3], 1 }
  0xa4   :  { %345 = vsyncpa [#allocation3 + $0x1], 1 }
  0xa5   :  { %346 = vsyncpa [#allocation8], 1 }
  0xa6   :  { %348 = vsyncpa [#allocation8 + $0x1], 1 }
  0xa7   :  { %349 = vsyncpa [#allocation4], 1 }
  0xa8   :  { %351 = vsyncpa [#allocation4 + $0x1], 1 }
  0xa9   :  { %352 = vsyncpa [#allocation5], 1 }
  0xaa   :  { %354 = vsyncpa [#allocation5 + $0x1], 1 }

</bundles_post_ra>
